<compile_context>
chip_gen: v6e
topology: v6e:2x2x1
jax: 0.10.0
libtpu: 0.0.40
codegen_flags: <defaults>
</compile_context>

<pallas_src>
import math

import jax
import jax.numpy as jnp
from jax.experimental import pallas as pl
from jax.experimental.pallas import tpu as pltpu


def _round_up(n, m):
    return ((n + m - 1) // m) * m


def mlp_kernel(x_ref, w_ref, b_ref, o_ref):
    # x_ref: (tb, W)   packed input block (W = in_dim * fold; 128-lane dense when possible)
    # w_ref: (W, fold) block-diagonal collapsed weight, resident across the grid
    # b_ref: (1, 1)    collapsed bias scalar in SMEM
    # o_ref: (tb, fold)
    acc = jnp.dot(x_ref[...], w_ref[...], preferred_element_type=jnp.float32)  # MXU
    o_ref[...] = (acc + b_ref[0, 0]).astype(o_ref.dtype)


def mlp_forward(x, params, *, block_bytes=4 * 1024 * 1024):
    """Numerically equivalent to Linear(in,12) -> Linear(12,4) -> Linear(4,1) applied to x."""
    (w1, b1), (w2, b2), (w3, b3) = params
    batch, in_dim = x.shape
    itemsize = jnp.dtype(x.dtype).itemsize

    # --- collapse the activation-free MLP into one affine map (once, outside the kernel).
    w_eff = (w1 @ w2) @ w3                                    # (in_dim, 1)
    b_eff = ((b1 @ w2 + b2) @ w3 + b3).reshape(1, 1).astype(jnp.float32)

    # --- lane packing: fold consecutive logical rows into one packed row so the last dim
    #     gets as close to 128 lanes as a FREE (contiguous, row-major) reshape allows.
    fold = math.gcd(batch, 128 // in_dim) if (in_dim <= 128 and 128 % in_dim == 0) else 1
    rows = batch // fold                                      # packed rows
    W = in_dim * fold                                         # packed row width (lanes)
    x_p = x.reshape(rows, W)                                  # no-copy row-major view

    # Block-diagonal collapsed weight: column c holds w_eff on rows [c*in_dim, (c+1)*in_dim).
    eye = jnp.eye(fold, dtype=w_eff.dtype)
    w_blk = (eye[:, None, :] * w_eff[None, :, 0, None]).reshape(W, fold)
    w_blk = w_blk.astype(x.dtype)                             # bf16 x -> bf16 MXU, f32 accum

    # --- tile size: multi-MiB blocks to amortize the ~0.35us per-step overhead, but keep
    #     roughly >= 8 grid steps (megacore sharding + pipeline depth on v7x).
    if rows <= 8:
        tb = rows                                             # block == full dim (always legal)
    else:
        tb_budget = max(8, (block_bytes // (W * itemsize)) // 8 * 8)
        tb_steps = _round_up(pl.cdiv(rows, 8), 8)
        tb = max(8, min(tb_budget, tb_steps))
    grid = (pl.cdiv(rows, tb),)                               # ragged tail masked by Pallas

    out = pl.pallas_call(
        mlp_kernel,
        out_shape=jax.ShapeDtypeStruct((rows, fold), jnp.float32),
        grid=grid,
        in_specs=[
            pl.BlockSpec((tb, W), lambda i: (i, 0)),          # x: streamed over packed rows
            pl.BlockSpec((W, fold), lambda i: (0, 0)),        # collapsed weight: resident
            pl.BlockSpec(memory_space=pltpu.SMEM),            # collapsed bias scalar
        ],
        out_specs=pl.BlockSpec((tb, fold), lambda i: (i, 0)),
        compiler_params=pltpu.CompilerParams(
            dimension_semantics=("parallel",),                # shard batch steps across TCs
        ),
        cost_estimate=pl.CostEstimate(
            flops=2 * rows * W * fold,
            transcendentals=0,
            bytes_accessed=rows * W * itemsize + rows * fold * 4 + W * fold * itemsize,
        ),
    )(x_p, w_blk, b_eff)

    return out.reshape(batch, 1)                              # free view back to (batch, 1)


def init_linear(key, in_features, out_features):
    # Deterministic init mimicking torch.nn.Linear's U(-1/sqrt(in), 1/sqrt(in)).
    kw, kb = jax.random.split(key)
    bound = 1.0 / (in_features ** 0.5)
    # Stored as [in, out] (pre-transposed vs torch's [out, in]); same math as x @ W.T + b.
    w = jax.random.uniform(kw, (in_features, out_features), jnp.float32, -bound, bound)
    b = jax.random.uniform(kb, (1, out_features), jnp.float32, -bound, bound)
    return w, b


def _reference(x, params):
    # Original (un-collapsed) three-layer math, as the PyTorch module computes it.
    (w1, b1), (w2, b2), (w3, b3) = params
    return ((x @ w1 + b1) @ w2 + b2) @ w3 + b3


if __name__ == "__main__":
    key = jax.random.PRNGKey(0)
    k_x1, k_x2, k_x3, k1, k2, k3 = jax.random.split(key, 6)

    input_dim = 32
    params = (
        init_linear(k1, input_dim, 12),
        init_linear(k2, 12, 4),
        init_linear(k3, 4, 1),
    )

    # Case 1: batch divisible by 4 -> full 128-lane packed path, MXU contraction.
    x1 = jax.random.normal(k_x1, (64, input_dim), jnp.float32)
    out1 = mlp_forward(x1, params)
    jax.block_until_ready(out1)
    assert out1.shape == (64, 1)
    assert jnp.allclose(out1, _reference(x1, params), atol=1e-5, rtol=1e-4)

    # Case 2: batch=50 -> fold=2 (64-lane pack); tiny block budget forces a multi-step
    # grid whose last block is ragged (exercises the no-pad tail-masking path).
    x2 = jax.random.normal(k_x2, (50, input_dim), jnp.float32)
    out2 = mlp_forward(x2, params, block_bytes=8 * 64 * 4)
    jax.block_until_ready(out2)
    assert out2.shape == (50, 1)
    assert jnp.allclose(out2, _reference(x2, params), atol=1e-5, rtol=1e-4)

    # Case 3: odd batch -> fold=1 fallback (no packing possible), ragged last block.
    x3 = jax.random.normal(k_x3, (11, input_dim), jnp.float32)
    out3 = mlp_forward(x3, params, block_bytes=8 * 32 * 4)
    jax.block_until_ready(out3)
    assert out3.shape == (11, 1)
    assert jnp.allclose(out3, _reference(x3, params), atol=1e-5, rtol=1e-4)

    print("KERNEL_OK")
</pallas_src>

<mosaic_0001>
module attributes {stable_mosaic.version = 11 : i64} {
  func.func @mlp_kernel(%arg0: i32, %arg1: memref<8x128xf32, #tpu.memory_space<vmem>>, %arg2: memref<128x4xf32, #tpu.memory_space<vmem>>, %arg3: memref<1x1xf32, #tpu.memory_space<smem>>, %arg4: memref<8x4xf32, #tpu.memory_space<vmem>>) attributes {dimension_semantics = [#tpu.dimension_semantics<parallel>], iteration_bounds = array<i64: 2>, scalar_prefetch = 0 : i64, scratch_operands = 0 : i64, tpu.core_type = #tpu.core_type<tc>, window_params = [{transform_indices = @transform_0, window_bounds = array<i64: 8, 128>}, {pipeline_mode = #tpu.pipeline_mode<synchronous>, transform_indices = @transform_1, window_bounds = array<i64: 128, 4>}, {transform_indices = @transform_2, window_bounds = array<i64: 1, 1>}, {transform_indices = @transform_3, window_bounds = array<i64: 8, 4>}]} {
    %c0 = arith.constant 0 : index
    %c0_0 = arith.constant 0 : index
    %0 = vector.load %arg1[%c0, %c0_0] : memref<8x128xf32, #tpu.memory_space<vmem>>, vector<8x128xf32>
    %c0_1 = arith.constant 0 : index
    %c0_2 = arith.constant 0 : index
    %1 = vector.load %arg2[%c0_1, %c0_2] : memref<128x4xf32, #tpu.memory_space<vmem>>, vector<128x4xf32>
    %cst = arith.constant dense<0.000000e+00> : vector<8x4xf32>
    %2 = tpu.matmul %0, %1, %cst {dimension_numbers = #tpu.dot_dimension_numbers<[1], [0], [0], [1], [0, 0, 1, 1], [], []>} : vector<8x128xf32>, vector<128x4xf32>, vector<8x4xf32> -> vector<8x4xf32>
    %c0_3 = arith.constant 0 : index
    %c0_4 = arith.constant 0 : index
    %3 = memref.load %arg3[%c0_3, %c0_4] : memref<1x1xf32, #tpu.memory_space<smem>>
    %4 = vector.broadcast %3 : f32 to vector<8x4xf32>
    %5 = arith.addf %2, %4 : vector<8x4xf32>
    %c0_5 = arith.constant 0 : index
    %c0_6 = arith.constant 0 : index
    %6 = vector.load %arg4[%c0_5, %c0_6] : memref<8x4xf32, #tpu.memory_space<vmem>>, vector<8x4xf32>
    tpu.vector_store %arg4[%c0_5, %c0_6], %5 {strides = array<i32>} : memref<8x4xf32, #tpu.memory_space<vmem>>, vector<8x4xf32>,
    return
  }
  func.func @transform_0(%arg0: i32) -> (i32, i32) {
    %c0_i32 = arith.constant 0 : i32
    %c0_i32_0 = arith.constant 0 : i32
    return %arg0, %c0_i32 : i32, i32
  }
  func.func @transform_1(%arg0: i32) -> (i32, i32) {
    %c0_i32 = arith.constant 0 : i32
    %c0_i32_0 = arith.constant 0 : i32
    %c0_i32_1 = arith.constant 0 : i32
    return %c0_i32, %c0_i32_0 : i32, i32
  }
  func.func @transform_2(%arg0: i32) -> (i32, i32) {
    %c0_i32 = arith.constant 0 : i32
    %c0_i32_0 = arith.constant 0 : i32
    %c0_i32_1 = arith.constant 0 : i32
    return %c0_i32, %c0_i32_0 : i32, i32
  }
  func.func @transform_3(%arg0: i32) -> (i32, i32) {
    %c0_i32 = arith.constant 0 : i32
    %c0_i32_0 = arith.constant 0 : i32
    return %arg0, %c0_i32 : i32, i32
  }
}

</mosaic_0001>

<bundles_post_ra>
// kernel: tpu_custom_call.1
= control target key start
LH: loop header
LB: loop body
LE: loop exit
PB: predicated region body
PF: predicated region fallthrough
CT: control target
= control target key end

     0   :  { %s415_s14 = smov 0   ;;  %s484_s0 = inlined_call_operand.vmem [shape: f32[16,128], index: 0, kind: input, shape index: {}]   ;;  %s485_s1 = inlined_call_operand.vmem [shape: f32[128,4], index: 1, kind: input, shape index: {}]   ;;  %s486_s2 = inlined_call_operand.<no memory space> [shape: f32[1,1], index: 2, kind: input, shape index: {}]   ;;  %s487_s3 = inlined_call_operand.vmem [shape: f32[16,4], index: 3, kind: output, shape index: {}]  }
   0x1   :  { %8 = sst [smem:[#allocation2]] %s486_s2 }
   0x2 LB: > { %s311_s15 = sadd.s32 4294967295, %s388_s14   ;;  %p315_p0 = scmp.ge.s32.totalorder %s388_s14, 1  ;;  %s388_s14 = sphi %s415_s14, %s14_s14  }
   0x3   : > { %p137_p1 = scmp.lt.s32.totalorder %s388_s14, 3 }
   0x5   : > { %p138_p2 = pnand %p315_p0, %p137_p1 }
   0x6   : > { %p159_p3 = scmp.lt.s32.totalorder (!%p138_p2), %s311_s15, 1 }
   0x7   : > { %141 = sbr.rel (%p138_p2) target bundleno = 241 (0xf1), region = 32 }
   0xc   : > { %v183_v0 = vld [vmem:[%s485_s1 + $0x78] sm:$0xff]  ;;  %v390_v1 = vmov 0.0   ;;  %v182_v2 = vld [vmem:[%s485_s1 + $0x70] sm:$0xff]  ;;  %vm391_vm0 = vmmov 0   ;;  %v181_v3 = vld [vmem:[%s485_s1 + $0x68] sm:$0xff]  ;;  %s489_s15 = smov (!%p159_p3, %s311_s15), 1 }
   0xd   : > { %337 = vmatprep.subr.mxu0 %v390_v1  ;;  %369 = vmatprep.mubr.msk.f32.mxu0 %vm391_vm0, %v390_v1  ;;  %v180_v4 = vld [vmem:[%s485_s1 + $0x60] sm:$0xff]  ;;  %v179_v5 = vld [vmem:[%s485_s1 + $0x58] sm:$0xff]  ;;  %v178_v6 = vld [vmem:[%s485_s1 + $0x50] sm:$0xff]  ;;  %s316_s16 = sshll.u32 %s489_s15, 3  ;;  %s184_s15 = sld [smem:[#allocation2]]  ;;  %vm256_vm1 = vcmask 31744  }
   0xe   : > { %338 = vmatpush3.msra.mxu0 %v183_v0  ;;  %v177_v7 = vld [vmem:[%s485_s1 + $0x48] sm:$0xff]  ;;  %v176_v8 = vld [vmem:[%s485_s1 + $0x40] sm:$0xff]  ;;  %v175_v9 = vld [vmem:[%s485_s1 + $0x38] sm:$0xff]  ;;  %s162_s22 = scalar_lea.vmem %s484_s0, %s316_s16  ;;  %s166_s27 = scalar_lea.vmem %s487_s3, %s316_s16 }
   0xf   : > { %339 = vmatprep.subr.mxu0 %v390_v1  ;;  %v174_v10 = vld [vmem:[%s485_s1 + $0x30] sm:$0xff]  ;;  %v173_v11 = vld [vmem:[%s485_s1 + $0x28] sm:$0xff]  ;;  %v172_v12 = vld [vmem:[%s485_s1 + $0x20] sm:$0xff] }
  0x10   : > { %340 = vmatpush3.msra.mxu0 %v182_v2  ;;  %v171_v13 = vld [vmem:[%s485_s1 + $0x18] sm:$0xff]  ;;  %v170_v14 = vld [vmem:[%s485_s1 + $0x10] sm:$0xff]  ;;  %v169_v15 = vld [vmem:[%s485_s1 + $0x8] sm:$0xff] }
  0x11   : > { %341 = vmatprep.subr.mxu0 %v390_v1  ;;  %v168_v16 = vld [vmem:[%s485_s1] sm:$0xff] }
  0x12   : > { %342 = vmatpush3.msra.mxu0 %v181_v3  ;;  %v167_v17 = vld [vmem:[%s162_s22] sm:$0xff] }
  0x13   : > { %343 = vmatprep.subr.mxu0 %v390_v1  ;;  %v185_v18 = vstv %s184_s15 }
  0x14   : > { %344 = vmatpush3.msra.mxu0 %v180_v4 }
  0x15   : > { %345 = vmatprep.subr.mxu0 %v390_v1 }
  0x16   : > { %346 = vmatpush3.msra.mxu0 %v179_v5 }
  0x17   : > { %347 = vmatprep.subr.mxu0 %v390_v1 }
  0x18   : > { %348 = vmatpush3.msra.mxu0 %v178_v6 }
  0x19   : > { %349 = vmatprep.subr.mxu0 %v390_v1 }
  0x1a   : > { %350 = vmatpush3.msra.mxu0 %v177_v7 }
  0x1b   : > { %351 = vmatprep.subr.mxu0 %v390_v1 }
  0x1c   : > { %352 = vmatpush3.msra.mxu0 %v176_v8 }
  0x1d   : > { %353 = vmatprep.subr.mxu0 %v390_v1 }
  0x1e   : > { %354 = vmatpush3.msra.mxu0 %v175_v9 }
  0x1f   : > { %355 = vmatprep.subr.mxu0 %v390_v1 }
  0x20   : > { %356 = vmatpush3.msra.mxu0 %v174_v10 }
  0x21   : > { %357 = vmatprep.subr.mxu0 %v390_v1 }
  0x22   : > { %358 = vmatpush3.msra.mxu0 %v173_v11 }
  0x23   : > { %359 = vmatprep.subr.mxu0 %v390_v1 }
  0x24   : > { %360 = vmatpush3.msra.mxu0 %v172_v12 }
  0x25   : > { %361 = vmatprep.subr.mxu0 %v390_v1 }
  0x26   : > { %362 = vmatpush3.msra.mxu0 %v171_v13 }
  0x27   : > { %363 = vmatprep.subr.mxu0 %v390_v1 }
  0x28   : > { %364 = vmatpush3.msra.mxu0 %v170_v14 }
  0x29   : > { %365 = vmatprep.subr.mxu0 %v390_v1 }
  0x2a   : > { %366 = vmatpush3.msra.mxu0 %v169_v15 }
  0x2b   : > { %367 = vmatprep.subr.mxu0 %v390_v1 }
  0x2c   : > { %368 = vmatpush3.msra.mxu0 %v168_v16 }
  0x2d   : > { %370 = vmatmul.mubr.f32.vlgmr.msra.gmra.mxu0 %v167_v17 }
  0xed   : > { %v252_v19 = vpop.f32.mrf.mxu0 }
  0xee   : > { %v253_v20 = vadd.f32 %v252_v19, %v185_v18 }
  0xef   : > { %v371_v21 = vpop.f32.mrf.mxu0 }
  0xf0   : > { %257 = vst.msk [vmem:[%s166_s27] sm:$0xff] %vm256_vm1, %v253_v20 }
  0xf1 PF: > { %s14_s14 = sadd.s32 1, %s388_s14  }
  0xf2   : > { %p11_p4 = scmp.ge.s32.totalorder %s14_s14, 4  }
  0xf4   :  { %13 = sbr.rel (!%p11_p4) target bundleno = 2 (0x2), region = 62 }

</bundles_post_ra>
